<compile_context>
chip_gen: v7x
topology: tpu7x:2x2x1
jax: 0.10.0
libtpu: 0.0.40
codegen_flags: <defaults>
</compile_context>

<pallas_src>
import math
from functools import partial

import jax
import jax.numpy as jnp
import numpy as np
from jax import lax
from jax.experimental import pallas as pl
from jax.experimental.pallas import tpu as pltpu


def _diff_attn_kernel(x_ref, wqkv_ref, wout_ref, lnw_ref, lnb_ref, lam_ref,
                      o_ref, acc_ref, *, E, H, D, lambda_init):
    f32 = jnp.float32

    x = x_ref[...]                                                   # (TS, E)

    # ---- fused QKV projection (MXU), f32 accumulation ----------------------
    qkv = jnp.dot(x, wqkv_ref[...], preferred_element_type=f32)      # (TS, 3E) f32

    scale = D ** (-0.5)

    def qk(region, idx):                                             # (TS, D)
        c = region * E + idx * D
        return qkv[:, c:c + D]

    # Fused value tile [v1_g | v2_g]: adjacent D-wide groups of the V region.
    def val(g):                                                      # (TS, 2D)
        c = 2 * E + 2 * g * D
        return qkv[:, c:c + 2 * D]

    values = [val(g) for g in range(H)]

    # NOTE: RoPE is intentionally omitted — attention is over the head axis at a
    # fixed sequence position with unrotated values, so the per-position rotation
    # (shared by q and k) cancels exactly in every score.

    # ---- attention over the head axis, packed per-(branch, head) softmax ----
    def softmax_weights(branch):                                     # branch 0 / 1
        ks = [qk(1, 2 * g + branch) for g in range(H)]
        out = []
        for h in range(H):
            q_h = qk(0, 2 * h + branch)
            scores = [jnp.sum(q_h * ks[g], axis=-1, keepdims=True) * scale
                      for g in range(H)]
            s = jnp.concatenate(scores, axis=-1)                     # (TS, H) packed
            m = jnp.max(s, axis=-1, keepdims=True)
            p = jnp.exp(s - m)
            inv = pl.reciprocal(jnp.sum(p, axis=-1, keepdims=True), approx=True)
            out.append(p * inv)                                      # (TS, H)
        return out

    w1 = softmax_weights(0)
    w2 = softmax_weights(1)

    # ---- fused differential combine + RMSNorm(2D, eps=1e-8, bias), per head -
    lam = lam_ref[0]                                                 # SMEM scalar
    lnw = lnw_ref[...].astype(f32)                                   # (1, 2D)
    lnb = lnb_ref[...].astype(f32)
    post = 1.0 - lambda_init
    inv_2d = 1.0 / (2.0 * D)

    for h in range(H):
        a1 = w1[h][:, 0:1] * values[0]
        a2 = w2[h][:, 0:1] * values[0]
        for g in range(1, H):
            a1 = a1 + w1[h][:, g:g + 1] * values[g]
            a2 = a2 + w2[h][:, g:g + 1] * values[g]
        z = a1 - lam * a2                                            # (TS, 2D)
        inv_rms = lax.rsqrt(jnp.sum(z * z, axis=-1, keepdims=True) * inv_2d + 1e-8)
        c0 = 2 * h * D
        acc_ref[:, c0:c0 + 2 * D] = ((z * inv_rms * lnw + lnb) * post
                                     ).astype(acc_ref.dtype)

    # ---- output projection (MXU): bf16 operands, f32 accumulation ----------
    o_ref[...] = jnp.dot(acc_ref[...], wout_ref[...],
                         preferred_element_type=f32).astype(o_ref.dtype)


def _vmem_budget_bytes():
    try:
        info = pltpu.get_tpu_info()
        cap = int(getattr(info, "vmem_capacity_bytes", 64 * 1024 * 1024))
    except Exception:
        cap = 64 * 1024 * 1024          # conservative (v7x-sized) default
    headroom = 12 * 1024 * 1024         # compiler-internal scratch headroom
    return int(min(max(cap - headroom, 32 * 1024 * 1024), 110 * 1024 * 1024))


def _pick_seq_tile(S, E, Dout, D, x_itemsize, w_itemsize, budget):
    # Resident weights are double-buffered by the default pipeline.
    fixed = 2 * (3 * E * E * w_itemsize + E * Dout * 2) + 4 * 2 * (2 * D) * 4
    per_row = (2 * E * x_itemsize          # x tile (double-buffered)
               + 2 * Dout * x_itemsize     # out tile (double-buffered)
               + 3 * E * 4                 # f32 qkv intermediate
               + E * 2                     # bf16 acc scratch
               + 8 * E * 4)                # slack for live f32 temporaries
    cap = 1024 if E <= 1024 else 512
    for ts in (1024, 512, 256, 128, 64, 32, 16, 8):       # lane/MXU friendly sizes
        if ts <= cap and S % ts == 0 and fixed + ts * per_row <= budget:
            return ts
    for ts in range(min(S, cap), 0, -1):                   # any divisor that fits
        if S % ts == 0 and fixed + ts * per_row <= budget:
            return ts
    return S


def differential_attention(x, params, *, num_heads, lambda_init, seq_tile=None):
    B, S, E = x.shape
    H = num_heads
    D = E // (H * 2)
    assert E == 2 * H * D, "embed_dim must equal 2 * num_heads * head_dim"

    wqkv_t = jnp.asarray(params['wqkv']).T                           # (E, 3E)
    wout_t = jnp.asarray(params['wout']).T                           # (E, Dout)
    if wout_t.dtype == jnp.float32:
        # bf16 RHS so the output projection stays at full MXU rate (bf16 LHS scratch).
        wout_t = wout_t.astype(jnp.bfloat16)
    Dout = wout_t.shape[1]

    budget = _vmem_budget_bytes()
    TS = seq_tile if seq_tile is not None else _pick_seq_tile(
        S, E, Dout, D, jnp.dtype(x.dtype).itemsize,
        jnp.dtype(wqkv_t.dtype).itemsize, budget)
    assert S % TS == 0, f"seq_tile {TS} must divide sequence length {S}"

    # lambda_full depends only on params: compute once, pass as an SMEM scalar.
    lam_full = (jnp.exp(jnp.sum(params['lambda_q1'].astype(jnp.float32) *
                                params['lambda_k1'].astype(jnp.float32))) -
                jnp.exp(jnp.sum(params['lambda_q2'].astype(jnp.float32) *
                                params['lambda_k2'].astype(jnp.float32))) +
                jnp.float32(lambda_init)).reshape((1,)).astype(jnp.float32)

    lnw = jnp.asarray(params['ln_weight']).reshape(1, 2 * D)
    lnb = jnp.asarray(params['ln_bias']).reshape(1, 2 * D)

    kernel = partial(_diff_attn_kernel, E=E, H=H, D=D, lambda_init=lambda_init)

    return pl.pallas_call(
        kernel,
        out_shape=jax.ShapeDtypeStruct((B, S, Dout), x.dtype),
        grid=(B, S // TS),
        in_specs=[
            pl.BlockSpec((pl.Squeezed(), TS, E), lambda b, s: (b, s, 0)),  # x tile
            pl.BlockSpec((E, 3 * E), lambda b, s: (0, 0)),                 # QKV weight
            pl.BlockSpec((E, Dout), lambda b, s: (0, 0)),                  # out weight
            pl.BlockSpec((1, 2 * D), lambda b, s: (0, 0)),                 # RMSNorm w
            pl.BlockSpec((1, 2 * D), lambda b, s: (0, 0)),                 # RMSNorm b
            pl.BlockSpec(memory_space=pltpu.MemorySpace.SMEM),             # lambda_full
        ],
        out_specs=pl.BlockSpec((pl.Squeezed(), TS, Dout), lambda b, s: (b, s, 0)),
        scratch_shapes=[pltpu.VMEM((TS, E), jnp.bfloat16)],
        compiler_params=pltpu.CompilerParams(
            dimension_semantics=("parallel", "parallel"),
            vmem_limit_bytes=budget),
    )(x, wqkv_t, wout_t, lnw, lnb, lam_full)


# ------------------------- pure-JAX reference --------------------------------
def _reference(x, params, *, num_heads, lambda_init):
    B, S, E = x.shape
    H = num_heads
    D = E // H // 2

    qkv = x @ params['wqkv'].T
    q, k, v = jnp.split(qkv, 3, axis=-1)
    q = q.reshape(B, S, 2 * H, D)
    k = k.reshape(B, S, 2 * H, D)
    v = v.reshape(B, S, H, 2, D)

    rot_dim = D // 2
    inv_freq = 1.0 / (10000.0 ** (np.arange(0, rot_dim, 2, dtype=np.float64) / rot_dim))
    ang = np.repeat(np.arange(S, dtype=np.float64)[:, None] * inv_freq[None, :], 2, axis=-1)
    cos = jnp.asarray(np.cos(ang), jnp.float32)[None, :, None, :]
    sin = jnp.asarray(np.sin(ang), jnp.float32)[None, :, None, :]

    def rope(t):
        t_rot, t_pass = t[..., :rot_dim], t[..., rot_dim:]
        tr = t_rot.reshape(t_rot.shape[:-1] + (rot_dim // 2, 2))
        rh = jnp.stack([-tr[..., 1], tr[..., 0]], axis=-1).reshape(t_rot.shape)
        return jnp.concatenate([t_rot * cos + rh * sin, t_pass], axis=-1)

    q = rope(q).reshape(B, S, H, 2, D)
    k = rope(k).reshape(B, S, H, 2, D)
    q1, q2 = q[..., 0, :], q[..., 1, :]
    k1, k2 = k[..., 0, :], k[..., 1, :]
    v1, v2 = v[..., 0, :], v[..., 1, :]

    def attn(qq, kk, vv):
        s = jnp.einsum('bshd,bsgd->bshg', qq, kk) * (D ** -0.5)
        w = jax.nn.softmax(s, axis=-1)
        return jnp.einsum('bshg,bsgd->bshd', w, vv)

    a1 = jnp.concatenate([attn(q1, k1, v1), attn(q1, k1, v2)], axis=-1)
    a2 = jnp.concatenate([attn(q2, k2, v1), attn(q2, k2, v2)], axis=-1)

    lam_full = (jnp.exp(jnp.sum(params['lambda_q1'] * params['lambda_k1'])) -
                jnp.exp(jnp.sum(params['lambda_q2'] * params['lambda_k2'])) + lambda_init)
    z = a1 - lam_full * a2
    z = z * lax.rsqrt(jnp.mean(z * z, axis=-1, keepdims=True) + 1e-8)
    z = (z * params['ln_weight'] + params['ln_bias']) * (1.0 - lambda_init)
    return z.reshape(B, S, E) @ params['wout'].T


if __name__ == "__main__":
    B, S = 2, 8
    embed_dim, num_heads, depth = 32, 2, 1
    D = embed_dim // num_heads // 2          # head_dim = 8

    key = jax.random.PRNGKey(0)
    keys = jax.random.split(key, 7)
    params = {
        'wqkv': 0.05 * jax.random.normal(keys[0], (3 * embed_dim, embed_dim), jnp.float32),
        'wout': 0.05 * jax.random.normal(keys[1], (embed_dim, embed_dim), jnp.float32),
        'lambda_q1': 0.1 * jax.random.normal(keys[2], (D,), jnp.float32),
        'lambda_k1': 0.1 * jax.random.normal(keys[3], (D,), jnp.float32),
        'lambda_q2': 0.1 * jax.random.normal(keys[4], (D,), jnp.float32),
        'lambda_k2': 0.1 * jax.random.normal(keys[5], (D,), jnp.float32),
        'ln_weight': jnp.ones((2 * D,), jnp.float32),
        'ln_bias': jnp.zeros((2 * D,), jnp.float32),
    }
    lambda_init = 0.8 - 0.6 * math.exp(-0.3 * depth)
    x = jax.random.normal(keys[6], (B, S, embed_dim), dtype=jnp.float32)

    out = differential_attention(x, params, num_heads=num_heads, lambda_init=lambda_init)
    out = jax.block_until_ready(out)

    ref = _reference(x, params, num_heads=num_heads, lambda_init=lambda_init)
    assert out.shape == (B, S, embed_dim)
    assert not bool(jnp.any(jnp.isnan(out)))
    np.testing.assert_allclose(np.asarray(out), np.asarray(ref), rtol=2e-2, atol=2e-2)
    print("KERNEL_OK")
</pallas_src>

<mosaic_0001>
module attributes {stable_mosaic.version = 11 : i64} {
  func.func @_diff_attn_kernel(%arg0: i32, %arg1: i32, %arg2: memref<1x8x32xf32, #tpu.memory_space<vmem>>, %arg3: memref<32x96xf32, #tpu.memory_space<vmem>>, %arg4: memref<32x32xbf16, #tpu.memory_space<vmem>>, %arg5: memref<1x16xf32, #tpu.memory_space<vmem>>, %arg6: memref<1x16xf32, #tpu.memory_space<vmem>>, %arg7: memref<1xf32, #tpu.memory_space<smem>>, %arg8: memref<1x8x32xf32, #tpu.memory_space<vmem>>, %arg9: memref<8x32xbf16, #tpu.memory_space<vmem>>) attributes {dimension_semantics = [#tpu.dimension_semantics<parallel>, #tpu.dimension_semantics<parallel>], iteration_bounds = array<i64: 2, 1>, scalar_prefetch = 0 : i64, scratch_operands = 1 : i64, tpu.core_type = #tpu.core_type<tc>, window_params = [{transform_indices = @transform_0, window_bounds = array<i64: 1, 8, 32>}, {pipeline_mode = #tpu.pipeline_mode<synchronous>, transform_indices = @transform_1, window_bounds = array<i64: 32, 96>}, {pipeline_mode = #tpu.pipeline_mode<synchronous>, transform_indices = @transform_2, window_bounds = array<i64: 32, 32>}, {pipeline_mode = #tpu.pipeline_mode<synchronous>, transform_indices = @transform_3, window_bounds = array<i64: 1, 16>}, {pipeline_mode = #tpu.pipeline_mode<synchronous>, transform_indices = @transform_4, window_bounds = array<i64: 1, 16>}, {transform_indices = @transform_5, window_bounds = array<i64: 1>}, {transform_indices = @transform_6, window_bounds = array<i64: 1, 8, 32>}]} {
    %c0 = arith.constant 0 : index
    %c0_0 = arith.constant 0 : index
    %c0_1 = arith.constant 0 : index
    %0 = vector.load %arg2[%c0, %c0_0, %c0_1] : memref<1x8x32xf32, #tpu.memory_space<vmem>>, vector<1x8x32xf32>
    %1 = vector.shape_cast %0 : vector<1x8x32xf32> to vector<8x32xf32>
    %c0_2 = arith.constant 0 : index
    %c0_3 = arith.constant 0 : index
    %2 = vector.load %arg3[%c0_2, %c0_3] : memref<32x96xf32, #tpu.memory_space<vmem>>, vector<32x96xf32>
    %cst = arith.constant dense<0.000000e+00> : vector<8x96xf32>
    %3 = tpu.matmul %1, %2, %cst {dimension_numbers = #tpu.dot_dimension_numbers<[1], [0], [0], [1], [0, 0, 1, 1], [], []>} : vector<8x32xf32>, vector<32x96xf32>, vector<8x96xf32> -> vector<8x96xf32>
    %4 = vector.extract_strided_slice %3 {offsets = [0, 64], sizes = [8, 16], strides = [1, 1]} : vector<8x96xf32> to vector<8x16xf32>
    %5 = vector.extract_strided_slice %3 {offsets = [0, 80], sizes = [8, 16], strides = [1, 1]} : vector<8x96xf32> to vector<8x16xf32>
    %6 = vector.extract_strided_slice %3 {offsets = [0, 32], sizes = [8, 8], strides = [1, 1]} : vector<8x96xf32> to vector<8x8xf32>
    %7 = vector.extract_strided_slice %3 {offsets = [0, 48], sizes = [8, 8], strides = [1, 1]} : vector<8x96xf32> to vector<8x8xf32>
    %8 = vector.extract_strided_slice %3 {offsets = [0, 0], sizes = [8, 8], strides = [1, 1]} : vector<8x96xf32> to vector<8x8xf32>
    %9 = arith.mulf %8, %6 : vector<8x8xf32>
    %cst_4 = arith.constant dense<0.000000e+00> : vector<8xf32>
    %10 = vector.multi_reduction <add>, %9, %cst_4 [1] : vector<8x8xf32> to vector<8xf32>
    %11 = vector.shape_cast %10 : vector<8xf32> to vector<8x1xf32>
    %cst_5 = arith.constant 0.353553385 : f32
    %12 = vector.broadcast %cst_5 : f32 to vector<8x1xf32>
    %13 = arith.mulf %11, %12 : vector<8x1xf32>
    %14 = arith.mulf %8, %7 : vector<8x8xf32>
    %cst_6 = arith.constant dense<0.000000e+00> : vector<8xf32>
    %15 = vector.multi_reduction <add>, %14, %cst_6 [1] : vector<8x8xf32> to vector<8xf32>
    %16 = vector.shape_cast %15 : vector<8xf32> to vector<8x1xf32>
    %cst_7 = arith.constant 0.353553385 : f32
    %17 = vector.broadcast %cst_7 : f32 to vector<8x1xf32>
    %18 = arith.mulf %16, %17 : vector<8x1xf32>
    %19 = tpu.concatenate %13, %18 in 1 : vector<8x1xf32>, vector<8x1xf32> -> vector<8x2xf32>
    %cst_8 = arith.constant dense<0xFF800000> : vector<8xf32>
    %20 = vector.multi_reduction <maximumf>, %19, %cst_8 [1] : vector<8x2xf32> to vector<8xf32>
    %21 = vector.shape_cast %20 : vector<8xf32> to vector<8x1xf32>
    %22 = vector.broadcast %21 : vector<8x1xf32> to vector<8x2xf32>
    %23 = arith.subf %19, %22 : vector<8x2xf32>
    %24 = math.exp %23 : vector<8x2xf32>
    %cst_9 = arith.constant dense<0.000000e+00> : vector<8xf32>
    %25 = vector.multi_reduction <add>, %24, %cst_9 [1] : vector<8x2xf32> to vector<8xf32>
    %26 = vector.shape_cast %25 : vector<8xf32> to vector<8x1xf32>
    %27 = tpu.reciprocal %26 {approx = true} : vector<8x1xf32> -> vector<8x1xf32>
    %28 = vector.broadcast %27 : vector<8x1xf32> to vector<8x2xf32>
    %29 = arith.mulf %24, %28 : vector<8x2xf32>
    %30 = vector.extract_strided_slice %3 {offsets = [0, 16], sizes = [8, 8], strides = [1, 1]} : vector<8x96xf32> to vector<8x8xf32>
    %31 = arith.mulf %30, %6 : vector<8x8xf32>
    %cst_10 = arith.constant dense<0.000000e+00> : vector<8xf32>
    %32 = vector.multi_reduction <add>, %31, %cst_10 [1] : vector<8x8xf32> to vector<8xf32>
    %33 = vector.shape_cast %32 : vector<8xf32> to vector<8x1xf32>
    %cst_11 = arith.constant 0.353553385 : f32
    %34 = vector.broadcast %cst_11 : f32 to vector<8x1xf32>
    %35 = arith.mulf %33, %34 : vector<8x1xf32>
    %36 = arith.mulf %30, %7 : vector<8x8xf32>
    %cst_12 = arith.constant dense<0.000000e+00> : vector<8xf32>
    %37 = vector.multi_reduction <add>, %36, %cst_12 [1] : vector<8x8xf32> to vector<8xf32>
    %38 = vector.shape_cast %37 : vector<8xf32> to vector<8x1xf32>
    %cst_13 = arith.constant 0.353553385 : f32
    %39 = vector.broadcast %cst_13 : f32 to vector<8x1xf32>
    %40 = arith.mulf %38, %39 : vector<8x1xf32>
    %41 = tpu.concatenate %35, %40 in 1 : vector<8x1xf32>, vector<8x1xf32> -> vector<8x2xf32>
    %cst_14 = arith.constant dense<0xFF800000> : vector<8xf32>
    %42 = vector.multi_reduction <maximumf>, %41, %cst_14 [1] : vector<8x2xf32> to vector<8xf32>
    %43 = vector.shape_cast %42 : vector<8xf32> to vector<8x1xf32>
    %44 = vector.broadcast %43 : vector<8x1xf32> to vector<8x2xf32>
    %45 = arith.subf %41, %44 : vector<8x2xf32>
    %46 = math.exp %45 : vector<8x2xf32>
    %cst_15 = arith.constant dense<0.000000e+00> : vector<8xf32>
    %47 = vector.multi_reduction <add>, %46, %cst_15 [1] : vector<8x2xf32> to vector<8xf32>
    %48 = vector.shape_cast %47 : vector<8xf32> to vector<8x1xf32>
    %49 = tpu.reciprocal %48 {approx = true} : vector<8x1xf32> -> vector<8x1xf32>
    %50 = vector.broadcast %49 : vector<8x1xf32> to vector<8x2xf32>
    %51 = arith.mulf %46, %50 : vector<8x2xf32>
    %52 = vector.extract_strided_slice %3 {offsets = [0, 40], sizes = [8, 8], strides = [1, 1]} : vector<8x96xf32> to vector<8x8xf32>
    %53 = vector.extract_strided_slice %3 {offsets = [0, 56], sizes = [8, 8], strides = [1, 1]} : vector<8x96xf32> to vector<8x8xf32>
    %54 = vector.extract_strided_slice %3 {offsets = [0, 8], sizes = [8, 8], strides = [1, 1]} : vector<8x96xf32> to vector<8x8xf32>
    %55 = arith.mulf %54, %52 : vector<8x8xf32>
    %cst_16 = arith.constant dense<0.000000e+00> : vector<8xf32>
    %56 = vector.multi_reduction <add>, %55, %cst_16 [1] : vector<8x8xf32> to vector<8xf32>
    %57 = vector.shape_cast %56 : vector<8xf32> to vector<8x1xf32>
    %cst_17 = arith.constant 0.353553385 : f32
    %58 = vector.broadcast %cst_17 : f32 to vector<8x1xf32>
    %59 = arith.mulf %57, %58 : vector<8x1xf32>
    %60 = arith.mulf %54, %53 : vector<8x8xf32>
    %cst_18 = arith.constant dense<0.000000e+00> : vector<8xf32>
    %61 = vector.multi_reduction <add>, %60, %cst_18 [1] : vector<8x8xf32> to vector<8xf32>
    %62 = vector.shape_cast %61 : vector<8xf32> to vector<8x1xf32>
    %cst_19 = arith.constant 0.353553385 : f32
    %63 = vector.broadcast %cst_19 : f32 to vector<8x1xf32>
    %64 = arith.mulf %62, %63 : vector<8x1xf32>
    %65 = tpu.concatenate %59, %64 in 1 : vector<8x1xf32>, vector<8x1xf32> -> vector<8x2xf32>
    %cst_20 = arith.constant dense<0xFF800000> : vector<8xf32>
    %66 = vector.multi_reduction <maximumf>, %65, %cst_20 [1] : vector<8x2xf32> to vector<8xf32>
    %67 = vector.shape_cast %66 : vector<8xf32> to vector<8x1xf32>
    %68 = vector.broadcast %67 : vector<8x1xf32> to vector<8x2xf32>
    %69 = arith.subf %65, %68 : vector<8x2xf32>
    %70 = math.exp %69 : vector<8x2xf32>
    %cst_21 = arith.constant dense<0.000000e+00> : vector<8xf32>
    %71 = vector.multi_reduction <add>, %70, %cst_21 [1] : vector<8x2xf32> to vector<8xf32>
    %72 = vector.shape_cast %71 : vector<8xf32> to vector<8x1xf32>
    %73 = tpu.reciprocal %72 {approx = true} : vector<8x1xf32> -> vector<8x1xf32>
    %74 = vector.broadcast %73 : vector<8x1xf32> to vector<8x2xf32>
    %75 = arith.mulf %70, %74 : vector<8x2xf32>
    %76 = vector.extract_strided_slice %3 {offsets = [0, 24], sizes = [8, 8], strides = [1, 1]} : vector<8x96xf32> to vector<8x8xf32>
    %77 = arith.mulf %76, %52 : vector<8x8xf32>
    %cst_22 = arith.constant dense<0.000000e+00> : vector<8xf32>
    %78 = vector.multi_reduction <add>, %77, %cst_22 [1] : vector<8x8xf32> to vector<8xf32>
    %79 = vector.shape_cast %78 : vector<8xf32> to vector<8x1xf32>
    %cst_23 = arith.constant 0.353553385 : f32
    %80 = vector.broadcast %cst_23 : f32 to vector<8x1xf32>
    %81 = arith.mulf %79, %80 : vector<8x1xf32>
    %82 = arith.mulf %76, %53 : vector<8x8xf32>
    %cst_24 = arith.constant dense<0.000000e+00> : vector<8xf32>
    %83 = vector.multi_reduction <add>, %82, %cst_24 [1] : vector<8x8xf32> to vector<8xf32>
    %84 = vector.shape_cast %83 : vector<8xf32> to vector<8x1xf32>
    %cst_25 = arith.constant 0.353553385 : f32
    %85 = vector.broadcast %cst_25 : f32 to vector<8x1xf32>
    %86 = arith.mulf %84, %85 : vector<8x1xf32>
    %87 = tpu.concatenate %81, %86 in 1 : vector<8x1xf32>, vector<8x1xf32> -> vector<8x2xf32>
    %cst_26 = arith.constant dense<0xFF800000> : vector<8xf32>
    %88 = vector.multi_reduction <maximumf>, %87, %cst_26 [1] : vector<8x2xf32> to vector<8xf32>
    %89 = vector.shape_cast %88 : vector<8xf32> to vector<8x1xf32>
    %90 = vector.broadcast %89 : vector<8x1xf32> to vector<8x2xf32>
    %91 = arith.subf %87, %90 : vector<8x2xf32>
    %92 = math.exp %91 : vector<8x2xf32>
    %cst_27 = arith.constant dense<0.000000e+00> : vector<8xf32>
    %93 = vector.multi_reduction <add>, %92, %cst_27 [1] : vector<8x2xf32> to vector<8xf32>
    %94 = vector.shape_cast %93 : vector<8xf32> to vector<8x1xf32>
    %95 = tpu.reciprocal %94 {approx = true} : vector<8x1xf32> -> vector<8x1xf32>
    %96 = vector.broadcast %95 : vector<8x1xf32> to vector<8x2xf32>
    %97 = arith.mulf %92, %96 : vector<8x2xf32>
    %c0_28 = arith.constant 0 : index
    %98 = memref.load %arg7[%c0_28] : memref<1xf32, #tpu.memory_space<smem>>
    %c0_29 = arith.constant 0 : index
    %c0_30 = arith.constant 0 : index
    %99 = vector.load %arg5[%c0_29, %c0_30] : memref<1x16xf32, #tpu.memory_space<vmem>>, vector<1x16xf32>
    %c0_31 = arith.constant 0 : index
    %c0_32 = arith.constant 0 : index
    %100 = vector.load %arg6[%c0_31, %c0_32] : memref<1x16xf32, #tpu.memory_space<vmem>>, vector<1x16xf32>
    %101 = vector.extract_strided_slice %29 {offsets = [0, 0], sizes = [8, 1], strides = [1, 1]} : vector<8x2xf32> to vector<8x1xf32>
    %102 = vector.broadcast %101 : vector<8x1xf32> to vector<8x16xf32>
    %103 = arith.mulf %102, %4 : vector<8x16xf32>
    %104 = vector.extract_strided_slice %75 {offsets = [0, 0], sizes = [8, 1], strides = [1, 1]} : vector<8x2xf32> to vector<8x1xf32>
    %105 = vector.broadcast %104 : vector<8x1xf32> to vector<8x16xf32>
    %106 = arith.mulf %105, %4 : vector<8x16xf32>
    %107 = vector.extract_strided_slice %29 {offsets = [0, 1], sizes = [8, 1], strides = [1, 1]} : vector<8x2xf32> to vector<8x1xf32>
    %108 = vector.broadcast %107 : vector<8x1xf32> to vector<8x16xf32>
    %109 = arith.mulf %108, %5 : vector<8x16xf32>
    %110 = arith.addf %103, %109 : vector<8x16xf32>
    %111 = vector.extract_strided_slice %75 {offsets = [0, 1], sizes = [8, 1], strides = [1, 1]} : vector<8x2xf32> to vector<8x1xf32>
    %112 = vector.broadcast %111 : vector<8x1xf32> to vector<8x16xf32>
    %113 = arith.mulf %112, %5 : vector<8x16xf32>
    %114 = arith.addf %106, %113 : vector<8x16xf32>
    %115 = vector.broadcast %98 : f32 to vector<8x16xf32>
    %116 = arith.mulf %115, %114 : vector<8x16xf32>
    %117 = arith.subf %110, %116 : vector<8x16xf32>
    %118 = arith.mulf %117, %117 : vector<8x16xf32>
    %cst_33 = arith.constant dense<0.000000e+00> : vector<8xf32>
    %119 = vector.multi_reduction <add>, %118, %cst_33 [1] : vector<8x16xf32> to vector<8xf32>
    %120 = vector.shape_cast %119 : vector<8xf32> to vector<8x1xf32>
    %cst_34 = arith.constant 6.250000e-02 : f32
    %121 = vector.broadcast %cst_34 : f32 to vector<8x1xf32>
    %122 = arith.mulf %120, %121 : vector<8x1xf32>
    %cst_35 = arith.constant 9.99999993E-9 : f32
    %123 = vector.broadcast %cst_35 : f32 to vector<8x1xf32>
    %124 = arith.addf %122, %123 : vector<8x1xf32>
    %125 = math.rsqrt %124 : vector<8x1xf32>
    %126 = vector.broadcast %125 : vector<8x1xf32> to vector<8x16xf32>
    %127 = arith.mulf %117, %126 : vector<8x16xf32>
    %128 = vector.broadcast %99 : vector<1x16xf32> to vector<8x16xf32>
    %129 = arith.mulf %127, %128 : vector<8x16xf32>
    %130 = vector.broadcast %100 : vector<1x16xf32> to vector<8x16xf32>
    %131 = arith.addf %129, %130 : vector<8x16xf32>
    %cst_36 = arith.constant 0.644490957 : f32
    %132 = vector.broadcast %cst_36 : f32 to vector<8x16xf32>
    %133 = arith.mulf %131, %132 : vector<8x16xf32>
    %134 = arith.truncf %133 : vector<8x16xf32> to vector<8x16xbf16>
    %c0_37 = arith.constant 0 : index
    %c0_38 = arith.constant 0 : index
    %135 = vector.load %arg9[%c0_37, %c0_38] : memref<8x32xbf16, #tpu.memory_space<vmem>>, vector<8x16xbf16>
    tpu.vector_store %arg9[%c0_37, %c0_38], %134 {strides = array<i32>} : memref<8x32xbf16, #tpu.memory_space<vmem>>, vector<8x16xbf16>,
    %136 = vector.extract_strided_slice %51 {offsets = [0, 0], sizes = [8, 1], strides = [1, 1]} : vector<8x2xf32> to vector<8x1xf32>
    %137 = vector.broadcast %136 : vector<8x1xf32> to vector<8x16xf32>
    %138 = arith.mulf %137, %4 : vector<8x16xf32>
    %139 = vector.extract_strided_slice %97 {offsets = [0, 0], sizes = [8, 1], strides = [1, 1]} : vector<8x2xf32> to vector<8x1xf32>
    %140 = vector.broadcast %139 : vector<8x1xf32> to vector<8x16xf32>
    %141 = arith.mulf %140, %4 : vector<8x16xf32>
    %142 = vector.extract_strided_slice %51 {offsets = [0, 1], sizes = [8, 1], strides = [1, 1]} : vector<8x2xf32> to vector<8x1xf32>
    %143 = vector.broadcast %142 : vector<8x1xf32> to vector<8x16xf32>
    %144 = arith.mulf %143, %5 : vector<8x16xf32>
    %145 = arith.addf %138, %144 : vector<8x16xf32>
    %146 = vector.extract_strided_slice %97 {offsets = [0, 1], sizes = [8, 1], strides = [1, 1]} : vector<8x2xf32> to vector<8x1xf32>
    %147 = vector.broadcast %146 : vector<8x1xf32> to vector<8x16xf32>
    %148 = arith.mulf %147, %5 : vector<8x16xf32>
    %149 = arith.addf %141, %148 : vector<8x16xf32>
    %150 = vector.broadcast %98 : f32 to vector<8x16xf32>
    %151 = arith.mulf %150, %149 : vector<8x16xf32>
    %152 = arith.subf %145, %151 : vector<8x16xf32>
    %153 = arith.mulf %152, %152 : vector<8x16xf32>
    %cst_39 = arith.constant dense<0.000000e+00> : vector<8xf32>
    %154 = vector.multi_reduction <add>, %153, %cst_39 [1] : vector<8x16xf32> to vector<8xf32>
    %155 = vector.shape_cast %154 : vector<8xf32> to vector<8x1xf32>
    %cst_40 = arith.constant 6.250000e-02 : f32
    %156 = vector.broadcast %cst_40 : f32 to vector<8x1xf32>
    %157 = arith.mulf %155, %156 : vector<8x1xf32>
    %cst_41 = arith.constant 9.99999993E-9 : f32
    %158 = vector.broadcast %cst_41 : f32 to vector<8x1xf32>
    %159 = arith.addf %157, %158 : vector<8x1xf32>
    %160 = math.rsqrt %159 : vector<8x1xf32>
    %161 = vector.broadcast %160 : vector<8x1xf32> to vector<8x16xf32>
    %162 = arith.mulf %152, %161 : vector<8x16xf32>
    %163 = vector.broadcast %99 : vector<1x16xf32> to vector<8x16xf32>
    %164 = arith.mulf %162, %163 : vector<8x16xf32>
    %165 = vector.broadcast %100 : vector<1x16xf32> to vector<8x16xf32>
    %166 = arith.addf %164, %165 : vector<8x16xf32>
    %cst_42 = arith.constant 0.644490957 : f32
    %167 = vector.broadcast %cst_42 : f32 to vector<8x16xf32>
    %168 = arith.mulf %166, %167 : vector<8x16xf32>
    %169 = arith.truncf %168 : vector<8x16xf32> to vector<8x16xbf16>
    %c0_43 = arith.constant 0 : index
    %c16 = arith.constant 16 : index
    %170 = vector.load %arg9[%c0_43, %c16] : memref<8x32xbf16, #tpu.memory_space<vmem>>, vector<8x16xbf16>
    tpu.vector_store %arg9[%c0_43, %c16], %169 {strides = array<i32>} : memref<8x32xbf16, #tpu.memory_space<vmem>>, vector<8x16xbf16>,
    %c0_44 = arith.constant 0 : index
    %c0_45 = arith.constant 0 : index
    %171 = vector.load %arg9[%c0_44, %c0_45] : memref<8x32xbf16, #tpu.memory_space<vmem>>, vector<8x32xbf16>
    %c0_46 = arith.constant 0 : index
    %c0_47 = arith.constant 0 : index
    %172 = vector.load %arg4[%c0_46, %c0_47] : memref<32x32xbf16, #tpu.memory_space<vmem>>, vector<32x32xbf16>
    %cst_48 = arith.constant dense<0.000000e+00> : vector<8x32xf32>
    %173 = tpu.matmul %171, %172, %cst_48 {dimension_numbers = #tpu.dot_dimension_numbers<[1], [0], [0], [1], [0, 0, 1, 1], [], []>} : vector<8x32xbf16>, vector<32x32xbf16>, vector<8x32xf32> -> vector<8x32xf32>
    %c0_49 = arith.constant 0 : index
    %c0_50 = arith.constant 0 : index
    %c0_51 = arith.constant 0 : index
    %174 = vector.load %arg8[%c0_49, %c0_50, %c0_51] : memref<1x8x32xf32, #tpu.memory_space<vmem>>, vector<1x8x32xf32>
    %175 = vector.shape_cast %174 : vector<1x8x32xf32> to vector<8x32xf32>
    %176 = vector.shape_cast %173 : vector<8x32xf32> to vector<1x8x32xf32>
    tpu.vector_store %arg8[%c0_49, %c0_50, %c0_51], %176 {strides = array<i32>} : memref<1x8x32xf32, #tpu.memory_space<vmem>>, vector<1x8x32xf32>,
    return
  }
  func.func @transform_0(%arg0: i32, %arg1: i32) -> (i32, i32, i32) {
    %c0_i32 = arith.constant 0 : i32
    %c0_i32_0 = arith.constant 0 : i32
    return %arg0, %arg1, %c0_i32 : i32, i32, i32
  }
  func.func @transform_1(%arg0: i32, %arg1: i32) -> (i32, i32) {
    %c0_i32 = arith.constant 0 : i32
    %c0_i32_0 = arith.constant 0 : i32
    %c0_i32_1 = arith.constant 0 : i32
    return %c0_i32, %c0_i32_0 : i32, i32
  }
  func.func @transform_2(%arg0: i32, %arg1: i32) -> (i32, i32) {
    %c0_i32 = arith.constant 0 : i32
    %c0_i32_0 = arith.constant 0 : i32
    %c0_i32_1 = arith.constant 0 : i32
    return %c0_i32, %c0_i32_0 : i32, i32
  }
  func.func @transform_3(%arg0: i32, %arg1: i32) -> (i32, i32) {
    %c0_i32 = arith.constant 0 : i32
    %c0_i32_0 = arith.constant 0 : i32
    %c0_i32_1 = arith.constant 0 : i32
    return %c0_i32, %c0_i32_0 : i32, i32
  }
  func.func @transform_4(%arg0: i32, %arg1: i32) -> (i32, i32) {
    %c0_i32 = arith.constant 0 : i32
    %c0_i32_0 = arith.constant 0 : i32
    %c0_i32_1 = arith.constant 0 : i32
    return %c0_i32, %c0_i32_0 : i32, i32
  }
  func.func @transform_5(%arg0: i32, %arg1: i32) -> i32 {
    %c0_i32 = arith.constant 0 : i32
    %c0_i32_0 = arith.constant 0 : i32
    return %c0_i32 : i32
  }
  func.func @transform_6(%arg0: i32, %arg1: i32) -> (i32, i32, i32) {
    %c0_i32 = arith.constant 0 : i32
    %c0_i32_0 = arith.constant 0 : i32
    return %arg0, %arg1, %c0_i32 : i32, i32, i32
  }
}

</mosaic_0001>

<bundles_post_ra>
// kernel: tpu_custom_call.1
= control target key start
LH: loop header
LB: loop body
LE: loop exit
PB: predicated region body
PF: predicated region fallthrough
CT: control target
= control target key end

     0   :  { %s1554_s0 = inlined_call_operand.hbm [shape: f32[2,8,32], index: 0, kind: input, shape index: {}]   ;;  %s1555_s1 = inlined_call_operand.hbm [shape: f32[32,96], index: 1, kind: input, shape index: {}]   ;;  %s1556_s2 = inlined_call_operand.hbm [shape: bf16[32,32], index: 2, kind: input, shape index: {}]   ;;  %s1557_s3 = inlined_call_operand.vmem [shape: f32[1,16], index: 3, kind: input, shape index: {}]   ;;  %s1558_s4 = inlined_call_operand.vmem [shape: f32[1,16], index: 4, kind: input, shape index: {}]   ;;  %s1559_s5 = inlined_call_operand.<no memory space> [shape: f32[1], index: 5, kind: input, shape index: {}]   ;;  %s1560_s6 = inlined_call_operand.hbm [shape: f32[2,8,32], index: 6, kind: output, shape index: {}]  }
   0x1   :  { %11 = sst [smem:[#allocation3]] %s1559_s5 }
   0x2   :  { %12 = vsyncpa [#allocation5], 0 }
   0x3   :  { %14 = vsyncpa [#allocation5 + $0x1], 0 }
   0x4   :  { %15 = vsyncpa [#allocation8], 0 }
   0x5   :  { %16 = vsyncpa [#allocation6], 0 }
   0x6   :  { %18 = vsyncpa [#allocation6 + $0x1], 0  ;;  %s1237_s23 = smov 0   ;;  %s1239_s24 = smov 0  }
   0x7   :  { %s1241_s25 = smov 0   ;;  %s1243_s26 = smov 0  }
   0x8   :  { %s1245_s27 = smov 0   ;;  %s1247_s28 = smov 0  }
   0x9 LB: > { %s823_s5 = sadd.s32 4294967295, %s1178_s28   ;;  %s824_s29 = sadd.s32 4294967294, %s1178_s28   ;;  %s1178_s28 = sphi %s1247_s28, %s24_s28   ;;  %s1174_s27 = sphi %s1245_s27, %s1582_s27   ;;  %s1170_s26 = sphi %s1243_s26, %s1581_s26   ;;  %s1166_s25 = sphi %s1241_s25, %s1580_s25   ;;  %s1162_s24 = sphi %s1239_s24, %s1579_s24   ;;  %s1158_s23 = sphi %s1237_s23, %s1578_s23  }
   0xa   : > { %p58_p0 = scmp.ne.s32.totalorder %s1162_s24, %s1158_s23  ;;  %p1271_p1 = scmp.eq.s32.totalorder %s823_s5, 0 }
   0xb   : > { %p1275_p2 = scmp.eq.s32.totalorder %s823_s5, 1  ;;  %p195_p3 = scmp.eq.s32.totalorder %s824_s29, 1 }
   0xc   : > { %s1565_s30 = scalar_select %p1271_p1, 1, 0 }
   0xd   : > { %p1281_p4 = por %p1271_p1, %p58_p0  ;;  %p825_p5 = scmp.ge.s32.totalorder %s1178_s28, 1 }
   0xe   : > { %p1286_p6 = por %p195_p3, %p58_p0  ;;  %p202_p7 = scmp.lt.s32.totalorder %s1178_s28, 3 }
   0xf   : > { %s1567_s8 = scalar_select %p1281_p4, 1, 0 }
  0x10   : > { %s1568_s9 = scalar_select %p1286_p6, 1, 0 }
  0x11   : > { %p1291_p8 = pnand %p825_p5, %p202_p7  ;;  %s1180_s11 = smov [#allocation7]  }
  0x12   : > { %s214_s12 = sshll.u32 %s1180_s11, 4  ;;  %s1181_s14 = smov [#allocation9]   ;;  %s1295_s12 = int_to_ptr.vmem [resolvable:$true] %s214_s12 }
  0x13   : > { %p895_p9 = pneg %p1291_p8  ;;  %s227_s15 = sshll.u32 %s1181_s14, 4  ;;  %s1306_s15 = int_to_ptr.vmem [resolvable:$true] %s227_s15 }
  0x14   : > { %s1006_s18 = scalar_lea.hbm %s1555_s1, 512 }
  0x15   : > { %p1302_p11 = pnand %p895_p9, %p1271_p1  ;;  %p1007_p12 = scmp.ne.s32.totalorder %s1555_s1, %s1006_s18 }
  0x16   : > { %p1013_p5 = scmp.lt.u32.totalorder %s1006_s18, %s1555_s1 }
  0x17   : > { %p1008_p13 = pneg %p1302_p11 }
  0x19   : > { %p1009_p0 = pnand %p1008_p13, %p1007_p12 }
  0x1b   : > { %p1010_p3 = pneg %p1009_p0 }
  0x1d   : > { %p1015_p7 = pnand %p1013_p5, %p1010_p3 }
  0x1f   : > { %1018 = shalt.err (!%p1015_p7)
}
  0x20   : > { %s1019_s5 = scalar_lea.vmem %s1295_s12, 512  ;;  %p1027_p1 = scmp.lt.s32.totalorder %s1295_s12, %s1295_s12 }
  0x21   : > { %p1020_p9 = scmp.ne.s32.totalorder %s1295_s12, %s1019_s5  ;;  %p1028_p12 = scmp.lt.s32.totalorder %s1019_s5, %s1019_s5 }
  0x23   : > { %p1022_p10 = pnand %p1020_p9, %p1008_p13  ;;  %p1029_p0 = por %p1028_p12, %p1027_p1 }
  0x25   : > { %p1023_p6 = pneg %p1022_p10 }
  0x27   : > { %p1030_p4 = pnand %p1029_p0, %p1023_p6 }
  0x29   : > { %1033 = shalt.err (!%p1030_p4)
}
  0x2a   : > { %s1182_s29 = smov 128   ;;  %s1183_s11 = smov 8  }
  0x2b   : > { %898 = dma.hbm_to_vmem [thread:$0]  (!%p1302_p11), %s1555_s1, 512, %s1295_s12, [#allocation8], %s1182_s29, %s1182_s29, %s1183_s11  }
  0x2c   : > { %s1034_s19 = scalar_lea.hbm %s1556_s2, 256 }
  0x2d   : > { %p1035_p1 = scmp.ne.s32.totalorder %s1556_s2, %s1034_s19  ;;  %p1041_p10 = scmp.lt.u32.totalorder %s1034_s19, %s1556_s2 }
  0x2f   : > { %p1037_p4 = pnand %p1035_p1, %p1008_p13 }
  0x31   : > { %p1038_p6 = pneg %p1037_p4 }
  0x33   : > { %p1043_p3 = pnand %p1041_p10, %p1038_p6 }
  0x35   : > { %1046 = shalt.err (!%p1043_p3)
}
  0x36   : > { %s1047_s12 = scalar_lea.vmem %s1306_s15, 256  ;;  %p1055_p12 = scmp.lt.s32.totalorder %s1306_s15, %s1306_s15 }
  0x37   : > { %p1048_p5 = scmp.ne.s32.totalorder %s1306_s15, %s1047_s12  ;;  %p1056_p0 = scmp.lt.s32.totalorder %s1047_s12, %s1047_s12 }
  0x39   : > { %p1050_p7 = pnand %p1048_p5, %p1008_p13  ;;  %p1057_p1 = por %p1056_p0, %p1055_p12 }
  0x3b   : > { %p1051_p9 = pneg %p1050_p7 }
  0x3d   : > { %p1058_p4 = pnand %p1057_p1, %p1051_p9 }
  0x3f   : > { %1061 = shalt.err (!%p1058_p4)
}
  0x40   : > { %s1184_s29 = smov 64   ;;  %s1185_s11 = smov 4  }
  0x41   : > { %901 = dma.hbm_to_vmem [thread:$0]  (!%p1302_p11), %s1556_s2, 256, %s1306_s15, [#allocation8], %s1184_s29, %s1184_s29, %s1185_s11  }
  0x42   : > { %s36_s17 = sadd.s32 1, %s1174_s27  ;;  %s45_s18 = sadd.s32 1, %s1166_s25 }
  0x43   : > { %p38_p13 = scmp.ge.s32.totalorder %s36_s17, 2  ;;  %p52_p6 = scmp.ne.s32.totalorder %s1166_s25, %s1162_s24 }
  0x44   : > { %p53_p10 = scmp.eq.s32.totalorder %s1178_s28, 0  ;;  %p912_p3 = scmp.lt.s32.totalorder %s1178_s28, 2 }
  0x45   : > { %s1584_s17 = smov (%p38_p13, %s36_s17), 0  ;;  %p1370_p7 = por %p1275_p2, %p52_p6 }
  0x46   : > { %p54_p5 = por %p53_p10, %p52_p6  ;;  %s40_s13 = ssub.s32 %s1174_s27, %s1584_s17 }
  0x47   : > { %s1571_s19 = scalar_select %p1370_p7, 1, 0 }
  0x48   : > { %s250_s20 = sand.u32 1, %s1166_s25   ;;  %p43_p9 = scmp.eq.s32.totalorder %s40_s13, 0 }
  0x49   : > { %s829_s15 = sshll.u32 %s250_s20, 3  ;;  %s830_s21 = sshll.u32 %s1174_s27, 7 }
  0x4a   : > { %s1379_s22 = scalar_select %p43_p9, %s1166_s25, %s45_s18  }
  0x4b   : > { %s1384_s29 = scalar_lea.hbm %s1554_s0, %s830_s21  ;;  %s254_s7 = scalar_lea.vmem [#allocation4], %s829_s15 }
  0x4c   : > { %s262_s11 = sshll.u32 %s254_s7, 4  ;;  %p1388_p2 = pnand %p912_p3, %p54_p5  ;;  %s1392_s11 = int_to_ptr.vmem [resolvable:$true] %s262_s11 }
  0x4d   : > { %s251_s16 = scalar_lea.sflag [#allocation5], %s250_s20  ;;  %s1062_s18 = scalar_lea.hbm %s1384_s29, 128 }
  0x4e   : > { %p1063_p11 = scmp.ne.s32.totalorder %s1384_s29, %s1062_s18  ;;  %p1064_p12 = pneg %p1388_p2 }
  0x4f   : > { %s1067_s21 = scalar_lea.hbm %s1554_s0, 256  ;;  %p1068_p4 = scmp.lt.u32.totalorder %s1384_s29, %s1554_s0 }
  0x50   : > { %p1065_p0 = pnand %p1064_p12, %p1063_p11  ;;  %p1069_p13 = scmp.lt.u32.totalorder %s1067_s21, %s1062_s18 }
  0x51   : > { %p1071_p10 = scmp.lt.u32.totalorder %s1062_s18, %s1384_s29 }
  0x52   : > { %p1066_p1 = pneg %p1065_p0  ;;  %p1070_p6 = por %p1069_p13, %p1068_p4 }
  0x54   : > { %p1072_p3 = por %p1071_p10, %p1070_p6 }
  0x56   : > { %p1073_p5 = pnand %p1072_p3, %p1066_p1 }
  0x58   : > { %1076 = shalt.err (!%p1073_p5)
}
  0x59   : > { %s1077_s20 = scalar_lea.vmem %s1392_s11, 128  ;;  %s1186_s7 = smov [#allocation4]  }
  0x5a   : > { %p1078_p9 = scmp.ne.s32.totalorder %s1392_s11, %s1077_s20  ;;  %s1082_s13 = sshll.u32 %s1186_s7, 4  ;;  %s1083_s13 = int_to_ptr.vmem [resolvable:$false] %s1082_s13 }
  0x5b   : > { %s1084_s15 = scalar_lea.vmem %s1083_s13, 256  ;;  %p1085_p7 = scmp.lt.s32.totalorder %s1392_s11, %s1083_s13 }
  0x5c   : > { %p1080_p11 = pnand %p1078_p9, %p1064_p12  ;;  %p1086_p4 = scmp.lt.s32.totalorder %s1084_s15, %s1077_s20 }
  0x5e   : > { %p1081_p0 = pneg %p1080_p11  ;;  %p1087_p13 = por %p1086_p4, %p1085_p7 }
  0x60   : > { %p1088_p6 = pnand %p1087_p13, %p1081_p0 }
  0x62   : > { %1091 = shalt.err (!%p1088_p6)
}
  0x63   : > { %905 = dma.hbm_to_vmem [thread:$0]  (!%p1388_p2), %s1384_s29, 128, %s1392_s11, %s251_s16  }
  0x64   : > { %271 = sbr.rel (%p1291_p8) target bundleno = 1926 (0x786), region = 44  ;;  %s1422_s18 = sand.u32 (!%p1291_p8), 1, %s1162_s24  }
  0x65   : > { %s832_s21 = sshll.u32 (!%p1291_p8), %s1422_s18, 3  ;;  %s274_s5 = scalar_lea.sflag (!%p1291_p8), [#allocation5], %s1422_s18 }
  0x66   : > { %s277_s12 = scalar_lea.vmem (!%p1291_p8), [#allocation4], %s832_s21  ;;  %p1573_p7 = scmp.ne.s32.totalorder (!%p1291_p8), %s1567_s8, 0 }
  0x6b   : > { %1145 = dma.done.wait (%p1573_p7), %s274_s5, 128  }
  0x6c   : > { %1147 = vsyncadd (%p1573_p7), %s274_s5, 4294967168  ;;  %p1574_p2 = scmp.ne.s32.totalorder %s1565_s30, 0 }
  0x6e   : > { %1149 = dma.done.wait (%p1574_p2), [#allocation8], 768  }
  0x6f   : > { %1151 = vsyncadd (%p1574_p2), [#allocation8], 4294966528  ;;  %v1187_v0 = vmov 0.0|0.0   ;;  %vm1188_vm0 = vmmov 0   ;;  %v1189_v1 = vmov 0.0   ;;  %v316_v2 = vld [vmem:[#allocation7] sm:$0xff] }
  0x70   : > { %877 = vmatprep.subr.bf16.mxu0 %v1187_v0  ;;  %866 = vmatprep.mubr.msk.f32.mxu0 %vm1188_vm0, %v1189_v1  ;;  %v317_v3 = vld [vmem:[#allocation7 + $0x8] sm:$0xff]  ;;  %v318_v4 = vld [vmem:[#allocation7 + $0x10] sm:$0xff]  ;;  %v319_v6 = vld [vmem:[#allocation7 + $0x18] sm:$0xff]  ;;  %vm320_vm1 = vcmask 261120   ;;  %s1190_s30 = smov 112   ;;  %s1191_s8 = smov 96  }
  0x71   : > { %869 = vmatprep.subr.bf16.mxu1 %v1189_v1  ;;  %873 = vmatprep.mubr.msk.bf16.mxu1 %vm1188_vm0, %v1189_v1  ;;  %v878_v5 = vpack.c.bf16 %v317_v3, %v316_v2  ;;  %v881_v7 = vpack.c.bf16 %v319_v6, %v318_v4  ;;  %v315_v8 = vld [vmem:[%s277_s12] sm:$0xff]  ;;  %s1192_s10 = smov 80   ;;  %s1193_s29 = smov 120   ;;  %vm399_vm2 = vcmask 64512   ;;  %vm412_vm3 = vcmask 7168  }
  0x72   : > { %s1194_s11 = smov 104   ;;  %vm414_vm4 = vcmask 15360   ;;  %s511_s14 = sld [smem:[#allocation3]]  ;;  %vm554_vm5 = vcmask 130048   ;;  %vm588_vm6 = vcmask 125952   ;;  %vm646_vm7 = vcmask 257152  }
  0x73   : > { %879 = vmatpush3.bf16.msra.mxu0 %v878_v5  ;;  %s1197_s16 = smov 64   ;;  %s845_s5 = sshll.u32 %s1170_s26, 7 }
  0x74   : > { %880 = vmatprep.subr.bf16.mxu0 %v1187_v0  ;;  %s313_s12 = scalar_lea.vmem [#allocation10], %s832_s21  ;;  %p1575_p12 = scmp.ne.s32.totalorder %s1571_s19, 0 }
  0x75   : > { %s1198_s21 = smov [#allocation10]  }
  0x77   : > { %882 = vmatpush3.bf16.msra.mxu0 %v881_v7 }
  0x7a   : > { %867 = vmatmul.mubr.msk.f32.vlgmr.msra.gmra.mrb[0].mxu0 %vm320_vm1, %v315_v8 }
 0x14d   : > { %v1440_v9 = vpop.f32.mrb[0].mxu0 }
 0x14e   : > { %426 = vrot.lane.b32.xlu1 %v1440_v9, %s1190_s30  ;;  %395 = vrot.lane.b32.xlu0 %v1440_v9, %s1191_s8  ;;  %v868_v10 = vpop.f32.mrb[1].mxu0 }
 0x152   : > { %404 = vrot.lane.b32.xlu0 %v1440_v9, %s1192_s10 }
 0x1c0   : > { %v396_v11 = vpop.permute.xlu0 %395  ;;  %v427_v13 = vpop.permute.xlu1 %426 }
 0x1c1   : > { %v398_v12 = vmul.f32 %v396_v11, %v1440_v9  ;;  %v429_v15 = vmul.f32 %v427_v13, %v1440_v9  ;;  %v1195_v13 = vmov 1  }
 0x1c2   : > { %981 = vset.pattern.permute.xlu0 %v1195_v13  ;;  %982 = vset.pattern.permute.xlu1 %v1195_v13  ;;  %v984_v13 = vld [vmem:[#allocation9] sm:$0xff]  }
 0x1c3   : > { %458 = vrot.lane.b32.xlu1 %v398_v12, %s1193_s29  ;;  %v400_v17 = vsel %vm399_vm2, %v398_v12, 0.0  ;;  %870 = vmatpush3.bf16.msra.mxu1 %v984_v13 }
 0x1c4   : > { %v405_v14 = vpop.permute.xlu0 %404  ;;  %871 = vmatprep.subr.bf16.mxu1 %v1189_v1 }
 0x1c5   : > { %v407_v16 = vmul.f32 %v405_v14, %v1440_v9 }
 0x1c7   : > { %485 = vrot.lane.b32.xlu1 %v429_v15, %s1194_s11  ;;  %466 = vrot.lane.b32.xlu0 %v407_v16, %s1193_s29  ;;  %v408_v18 = vsel %vm399_vm2, %v407_v16, 0.0 }
 0x1cb   : > { %431 = vrot.lane.b32.xlu1 %v429_v15, %s1190_s30  ;;  %492 = vrot.lane.b32.xlu0 %v398_v12, %s1194_s11  ;;  %s1504_s11 = scalar_lea.hbm %s1560_s6, %s845_s5 }
 0x1cf   : > { %439 = vrot.lane.b32.xlu0 %v398_v12, %s1190_s30 }
 0x1ee   : > { %401 = vadd.xlane.f32.xlu0 %v400_v17 }
 0x1ef   : > { %409 = vadd.xlane.f32.xlu1 %v408_v18 }
 0x235   : > { %v459_v19 = vpop.permute.xlu1 %458 }
 0x236   : > { %v461_v20 = vsel %vm399_vm2, %v459_v19, 0.0 }
 0x237   : > { %462 = vadd.xlane.f32.xlu1 %v461_v20 }
 0x239   : > { %v486_v21 = vpop.permute.xlu1 %485  ;;  %v467_v22 = vpop.permute.xlu0 %466 }
 0x23a   : > { %v469_v23 = vsel %vm399_vm2, %v467_v22, 0.0  ;;  %v488_v25 = vsel %vm399_vm2, %v486_v21, 0.0 }
 0x23b   : > { %470 = vadd.xlane.f32.xlu0 %v469_v23 }
 0x23d   : > { %v493_v24 = vpop.permute.xlu0 %492  ;;  %v432_v27 = vpop.permute.xlu1 %431 }
 0x23e   : > { %v495_v26 = vsel %vm399_vm2, %v493_v24, 0.0  ;;  %v434_v29 = vsel %vm399_vm2, %v432_v27, 0.0 }
 0x23f   : > { %489 = vadd.xlane.f32.xlu0 %v488_v25  ;;  %496 = vadd.xlane.f32.xlu1 %v495_v26  ;;  %v1196_v26 = vmov 0  }
 0x241   : > { %v440_v28 = vpop.permute.xlu0 %439 }
 0x242   : > { %v442_v30 = vsel %vm399_vm2, %v440_v28, 0.0 }
 0x243   : > { %435 = vadd.xlane.f32.xlu0 %v434_v29  ;;  %443 = vadd.xlane.f32.xlu1 %v442_v30 }
 0x27b   : > { %v402_v32 = vpop.xlane.xlu0 %401 }
 0x27c   : > { %v410_v31 = vpop.xlane.xlu1 %409  ;;  %v403_v34 = vmul.f32 0.35355338, %v402_v32 }
 0x27d   : > { %v411_v36 = vmul.f32 0.35355338, %v410_v31 }
 0x27f   : > { %v413_v45 = vsel %vm412_vm3, %v403_v34, %v411_v36 }
 0x280   : > { %v415_v49 = vsel %vm414_vm4, %v413_v45, -inf }
 0x2c4   : > { %v463_v33 = vpop.xlane.xlu1 %462 }
 0x2c5   : > { %v464_v37 = vmul.f32 0.35355338, %v463_v33 }
 0x2c8   : > { %v471_v35 = vpop.xlane.xlu0 %470 }
 0x2c9   : > { %v472_v38 = vmul.f32 0.35355338, %v471_v35 }
 0x2cb   : > { %v473_v39 = vsel %vm412_vm3, %v464_v37, %v472_v38 }
 0x2cc   : > { %v490_v40 = vpop.xlane.xlu0 %489  ;;  %v497_v41 = vpop.xlane.xlu1 %496  ;;  %v474_v42 = vsel %vm414_vm4, %v473_v39, -inf }
 0x2cd   : > { %v491_v43 = vmul.f32 0.35355338, %v490_v40  ;;  %v498_v44 = vmul.f32 0.35355338, %v497_v41  ;;  %475 = vmax.xlane.f32.xlu0 %v474_v42  ;;  %v546_v42 = vstv %s511_s14  ;;  %s1096_s14 = sshll.u32 %s1198_s21, 4  ;;  %s1097_s14 = int_to_ptr.vmem [resolvable:$false] %s1096_s14 }
 0x2cf   : > { %v499_v46 = vsel %vm412_vm3, %v491_v43, %v498_v44 }
 0x2d0   : > { %v436_v47 = vpop.xlane.xlu0 %435  ;;  %v444_v48 = vpop.xlane.xlu1 %443  ;;  %v500_v50 = vsel %vm414_vm4, %v499_v46, -inf }
 0x2d1   : > { %v437_v51 = vmul.f32 0.35355338, %v436_v47  ;;  %v445_v52 = vmul.f32 0.35355338, %v444_v48  ;;  %416 = vmax.xlane.f32.xlu0 %v415_v49  ;;  %501 = vmax.xlane.f32.xlu1 %v500_v50 }
 0x2d3   : > { %v446_v53 = vsel %vm412_vm3, %v437_v51, %v445_v52 }
 0x2d4   : > { %v447_v54 = vsel %vm414_vm4, %v446_v53, -inf }
 0x2d5   : > { %448 = vmax.xlane.f32.xlu1 %v447_v54 }
 0x35a   : > { %v476_v55 = vpop.xlane.xlu0 %475 }
 0x35b   : > { %v477_v56 = vsub.f32 %v473_v39, %v476_v55 }
 0x35d   : > { %v478_v57 = vmul.f32 1.442695, %v477_v56 }
 0x35e   : > { %v417_v58 = vpop.xlane.xlu0 %416  ;;  %v502_v59 = vpop.xlane.xlu1 %501 }
 0x35f   : > { %986 = vpow2.f32 %v478_v57  ;;  %v418_v60 = vsub.f32 %v413_v45, %v417_v58  ;;  %v503_v61 = vsub.f32 %v499_v46, %v502_v59 }
 0x361   : > { %v419_v62 = vmul.f32 1.442695, %v418_v60  ;;  %v504_v63 = vmul.f32 1.442695, %v503_v61 }
 0x362   : > { %v449_v0 = vpop.xlane.xlu1 %448 }
 0x363   : > { %988 = vpow2.f32 %v419_v62  ;;  %v450_v2 = vsub.f32 %v446_v53, %v449_v0  ;;  %v837_v62 = vld [vmem:[%s1557_s3] ss:$0 sm:$0xff] }
 0x364   : > { %990 = vpow2.f32 %v504_v63 }
 0x365   : > { %v451_v3 = vmul.f32 1.442695, %v450_v2 }
 0x367   : > { %992 = vpow2.f32 %v451_v3 }
 0x369   : > { %v987_v4 = vpop.eup %986 }
 0x36a   : > { %v480_v5 = vsel %vm414_vm4, %v987_v4, 0.0 }
 0x36b   : > { %481 = vadd.xlane.f32.xlu0 %v480_v5 }
 0x36d   : > { %v989_v6 = vpop.eup %988 }
 0x36e   : > { %v991_v7 = vpop.eup %990  ;;  %v421_v8 = vsel %vm414_vm4, %v989_v6, 0.0 }
 0x36f   : > { %422 = vadd.xlane.f32.xlu0 %v421_v8  ;;  %v506_v10 = vsel %vm414_vm4, %v991_v7, 0.0 }
 0x370   : > { %507 = vadd.xlane.f32.xlu1 %v506_v10 }
 0x371   : > { %v993_v11 = vpop.eup %992 }
 0x372   : > { %v453_v12 = vsel %vm414_vm4, %v993_v11, 0.0 }
 0x374   : > { %454 = vadd.xlane.f32.xlu1 %v453_v12 }
 0x3f8   : > { %v482_v14 = vpop.xlane.xlu0 %481 }
 0x3f9   : > { %994 = vrcp.f32 %v482_v14 }
 0x3fc   : > { %v423_v15 = vpop.xlane.xlu0 %422 }
 0x3fd   : > { %996 = vrcp.f32 %v423_v15  ;;  %v508_v16 = vpop.xlane.xlu1 %507 }
 0x3fe   : > { %998 = vrcp.f32 %v508_v16  ;;  %v985_v16 = vld [vmem:[#allocation9 + $0x8] sm:$0xff]  }
 0x3ff   : > { %872 = vmatpush3.bf16.msra.mxu1 %v985_v16 }
 0x401   : > { %v455_v17 = vpop.xlane.xlu1 %454 }
 0x402   : > { %1000 = vrcp.f32 %v455_v17 }
 0x403   : > { %v995_v18 = vpop.eup %994 }
 0x404   : > { %v484_v19 = vmul.f32 %v995_v18, %v987_v4 }
 0x406   : > { %537 = vperm.xlu0 %981, %v484_v19  }
 0x407   : > { %v997_v20 = vpop.eup %996 }
 0x408   : > { %v425_v21 = vmul.f32 %v997_v20, %v989_v6  ;;  %v999_v22 = vpop.eup %998 }
 0x409   : > { %v510_v23 = vmul.f32 %v999_v22, %v991_v7 }
 0x40a   : > { %527 = vperm.xlu1 %982, %v425_v21  }
 0x40c   : > { %v1001_v24 = vpop.eup %1000 }
 0x40d   : > { %v457_v25 = vmul.f32 %v1001_v24, %v993_v11 }
 0x40e   : > { %613 = vperm.xlu1 %982, %v510_v23  }
 0x412   : > { %603 = vperm.xlu1 %982, %v457_v25  }
 0x416   : > { %983 = vset.pattern.permute.xlu1 %v1196_v26 }
 0x417   : > { %516 = vperm.xlu1 %983, %v425_v21  }
 0x41b   : > { %522 = vperm.xlu1 %983, %v484_v19  }
 0x41f   : > { %598 = vperm.xlu1 %983, %v510_v23  }
 0x423   : > { %592 = vperm.xlu1 %983, %v457_v25  }
 0x485   : > { %v538_v27 = vpop.permute.xlu0 %537 }
 0x486   : > { %v540_v28 = vmul.f32 %v538_v27, %v1440_v9 }
 0x488   : > { %542 = vrot.lane.b32.xlu1 %v540_v28, %s1190_s30 }
 0x489   : > { %v528_v29 = vpop.permute.xlu1 %527 }
 0x48a   : > { %v530_v30 = vmul.f32 %v528_v29, %v1440_v9 }
 0x48c   : > { %532 = vrot.lane.b32.xlu1 %v530_v30, %s1190_s30 }
 0x48d   : > { %v614_v31 = vpop.permute.xlu1 %613 }
 0x48e   : > { %v616_v32 = vmul.f32 %v614_v31, %v1440_v9 }
 0x490   : > { %618 = vrot.lane.b32.xlu0 %v616_v32, %s1190_s30 }
 0x491   : > { %v604_v33 = vpop.permute.xlu1 %603 }
 0x492   : > { %v606_v34 = vmul.f32 %v604_v33, %v1440_v9 }
 0x494   : > { %608 = vrot.lane.b32.xlu0 %v606_v34, %s1190_s30  ;;  %s724_s30 = sshll.u32 %s313_s12, 4  ;;  %s1506_s30 = int_to_ptr.vmem [resolvable:$true] %s724_s30 }
 0x495   : > { %s1092_s26 = scalar_lea.vmem %s1506_s30, 128  ;;  %p1099_p3 = scmp.lt.s32.totalorder %s1506_s30, %s1097_s14 }
 0x496   : > { %v517_v35 = vpop.permute.xlu1 %516  ;;  %p1093_p8 = scmp.ne.s32.totalorder %s1506_s30, %s1092_s26 }
 0x497   : > { %v519_v43 = vmul.f32 %v517_v35, %v1440_v9 }
 0x498   : > { %p1094_p1 = pnand %p1093_p8, %p1575_p12 }
 0x49a   : > { %v523_v36 = vpop.permute.xlu1 %522  ;;  %p1095_p10 = pneg %p1094_p1 }
 0x49b   : > { %v525_v39 = vmul.f32 %v523_v36, %v1440_v9 }
 0x49e   : > { %v599_v37 = vpop.permute.xlu1 %598 }
 0x49f   : > { %v601_v47 = vmul.f32 %v599_v37, %v1440_v9 }
 0x4a2   : > { %v593_v38 = vpop.permute.xlu1 %592 }
 0x4a3   : > { %v595_v52 = vmul.f32 %v593_v38, %v1440_v9  ;;  %v838_v9 = vld [vmem:[%s1558_s4] ss:$0 sm:$0xff] }
 0x4fa   : > { %v543_v40 = vpop.permute.xlu1 %542 }
 0x4fb   : > { %v545_v41 = vadd.f32 %v543_v40, %v525_v39 }
 0x4fd   : > { %v547_v45 = vmul.f32 %v546_v42, %v545_v41 }
 0x4fe   : > { %v533_v44 = vpop.permute.xlu1 %532 }
 0x4ff   : > { %v535_v46 = vadd.f32 %v533_v44, %v519_v43 }
 0x501   : > { %v548_v48 = vsub.f32 %v535_v46, %v547_v45 }
 0x502   : > { %v619_v49 = vpop.permute.xlu0 %618 }
 0x503   : > { %v621_v50 = vadd.f32 %v619_v49, %v601_v47  ;;  %v549_v51 = vmul.f32 %v548_v48, %v548_v48 }
 0x505   : > { %551 = vrot.lane.b32.xlu1 %v549_v51, %s1197_s16  ;;  %v622_v54 = vmul.f32 %v621_v50, %v546_v42 }
 0x506   : > { %v609_v53 = vpop.permute.xlu0 %608 }
 0x507   : > { %v611_v55 = vadd.f32 %v609_v53, %v595_v52 }
 0x509   : > { %v623_v56 = vsub.f32 %v611_v55, %v622_v54 }
 0x50b   : > { %v624_v57 = vmul.f32 %v623_v56, %v623_v56 }
 0x50d   : > { %626 = vrot.lane.b32.xlu0 %v624_v57, %s1197_s16 }
 0x577   : > { %v552_v58 = vpop.permute.xlu1 %551 }
 0x578   : > { %v555_v59 = vsel %vm554_vm5, %v552_v58, 0.0 }
 0x579   : > { %556 = vadd.xlane.f32.xlu1 %v555_v59 }
 0x57f   : > { %v627_v60 = vpop.permute.xlu0 %626 }
 0x580   : > { %v629_v61 = vsel %vm554_vm5, %v627_v60, 0.0 }
 0x581   : > { %630 = vadd.xlane.f32.xlu0 %v629_v61 }
 0x58a   : > { %576 = vrot.lane.b32.xlu1 %v838_v9, %s1197_s16 }
 0x597   : > { %567 = vrot.lane.b32.xlu0 %v837_v62, %s1197_s16 }
 0x606   : > { %v557_v63 = vpop.xlane.xlu1 %556 }
 0x607   : > { %v558_v0 = vmul.f32 0.0625, %v557_v63 }
 0x609   : > { %v559_v2 = vadd.f32 1e-08, %v558_v0 }
 0x60a   : > { %v577_v10 = vpop.permute.xlu1 %576 }
 0x60b   : > { %1002 = vrsqrt.f32 %v559_v2 }
 0x60e   : > { %v631_v3 = vpop.xlane.xlu0 %630 }
 0x60f   : > { %v632_v4 = vmul.f32 0.0625, %v631_v3 }
 0x611   : > { %v633_v5 = vadd.f32 1e-08, %v632_v4 }
 0x612   : > { %v568_v7 = vpop.permute.xlu0 %567 }
 0x613   : > { %1004 = vrsqrt.f32 %v633_v5 }
 0x615   : > { %v1003_v6 = vpop.eup %1002 }
 0x616   : > { %v561_v8 = vmul.f32 %v1003_v6, %v548_v48 }
 0x618   : > { %v570_v11 = vmul.f32 %v568_v7, %v561_v8 }
 0x61a   : > { %v579_v12 = vadd.f32 %v577_v10, %v570_v11 }
 0x61c   : > { %v580_v14 = vmul.f32 0.64449096, %v579_v12 }
 0x61d   : > { %v1005_v15 = vpop.eup %1004 }
 0x61e   : > { %v635_v17 = vmul.f32 %v1005_v15, %v623_v56  ;;  %v848_v18 = vpack.c.bf16 %v580_v14, %v580_v14 }
 0x620   : > { %v636_v19 = vmul.f32 %v635_v17, %v568_v7  ;;  %585 = vrot.lane.b32.xlu1 %v848_v18, %s1197_s16  ;;  %s1098_s16 = scalar_lea.vmem %s1097_s14, 256 }
 0x621   : > { %p1100_p5 = scmp.lt.s32.totalorder %s1098_s16, %s1092_s26 }
 0x622   : > { %v637_v20 = vadd.f32 %v636_v19, %v577_v10 }
 0x623   : > { %p1101_p9 = por %p1100_p5, %p1099_p3 }
 0x624   : > { %v638_v21 = vmul.f32 0.64449096, %v637_v20 }
 0x625   : > { %p1102_p11 = pnand %p1101_p9, %p1095_p10 }
 0x626   : > { %v849_v22 = vpack.c.bf16 %v638_v21, %v638_v21 }
 0x628   : > { %643 = vrot.lane.b32.xlu0 %v849_v22, %s1192_s10  ;;  %s710_s10 = scalar_lea.sflag [#allocation6], %s1422_s18 }
 0x692   : > { %v586_v23 = vpop.permute.xlu1 %585 }
 0x693   : > { %589 = vst.msk [vmem:[#allocation2] sm:$0xf] %vm588_vm6, %v586_v23 }
 0x69a   : > { %v644_v24 = vpop.permute.xlu0 %643 }
 0x69b   : > { %647 = vst.msk [vmem:[#allocation2] sm:$0xf] %vm646_vm7, %v644_v24 }
 0x6a2   : > { %v648_v1 = vld [vmem:[#allocation2] sm:$0xf] }
 0x6a3   : > { %874 = vmatmul.mubr.msk.bf16.vlgmr.msra.gmra.mrb[0].mxu1 %vm320_vm1, %v648_v1 }
 0x776   : > { %v702_v25 = vpop.f32.mrb[0].mxu1 }
 0x777   : > { %708 = vst.msk [vmem:[%s313_s12] sm:$0xff] %vm320_vm1, %v702_v25  ;;  %v875_v26 = vpop.f32.mrb[1].mxu1 }
 0x778   : > { %v705_v27 = vpop.f32.mrb[2].mxu1 }
 0x779   : > { %1105 = shalt.err (!%p1102_p11)
}
 0x77a   : > { %s1106_s18 = scalar_lea.hbm %s1504_s11, 128  ;;  %s1110_s13 = scalar_lea.hbm %s1560_s6, 256 }
 0x77b   : > { %p1107_p0 = scmp.ne.s32.totalorder %s1504_s11, %s1106_s18  ;;  %p1111_p6 = scmp.lt.u32.totalorder %s1504_s11, %s1560_s6 }
 0x77c   : > { %p1112_p7 = scmp.lt.u32.totalorder %s1110_s13, %s1106_s18  ;;  %p1114_p8 = scmp.lt.u32.totalorder %s1106_s18, %s1504_s11 }
 0x77d   : > { %p1108_p4 = pnand %p1107_p0, %p1575_p12 }
 0x77e   : > { %p1113_p2 = por %p1112_p7, %p1111_p6 }
 0x77f   : > { %p1109_p13 = pneg %p1108_p4 }
 0x780   : > { %p1115_p1 = por %p1114_p8, %p1113_p2 }
 0x782   : > { %p1116_p10 = pnand %p1115_p1, %p1109_p13 }
 0x784   : > { %1119 = shalt.err (!%p1116_p10)
}
 0x785   : > { %893 = dma.vmem_to_hbm [thread:$0]  (%p1575_p12), %s1506_s30, 128, %s1504_s11, %s710_s10   ;;  %v876_v28 = vpop.f32.mrb[3].mxu1 }
 0x786 PF: > { %s736_s12 = sand.u32 1, %s1158_s23   ;;  %p1576_p3 = scmp.ne.s32.totalorder %s1568_s9, 0 }
 0x787   : > { %p1577_p5 = scmp.ge.s32.totalorder %s1178_s28, 2  ;;  %s737_s8 = scalar_lea.sflag [#allocation6], %s736_s12 }
 0x789   : > { %p907_p9 = pnand %p1577_p5, %p1576_p3 }
 0x78b   : > { %1153 = dma.done.wait (!%p907_p9), %s737_s8, 128  }
 0x78c   : > { %1155 = vsyncadd (!%p907_p9), %s737_s8, 4294967168  ;;  %s24_s28 = sadd.s32 1, %s1178_s28   ;;  %s1578_s23 = smov %s1162_s24 }
 0x78d   : > { %p21_p11 = scmp.ge.s32.totalorder %s24_s28, 4   ;;  %s1579_s24 = smov %s1166_s25 }
 0x78e   : > { %s1580_s25 = smov %s1379_s22  ;;  %s1581_s26 = smov %s1174_s27 }
 0x78f   : > { %s1582_s27 = smov %s1584_s17  ;;  %23 = sbr.rel (!%p21_p11) target bundleno = 9 (0x9), region = 97 }
 0x796   :  { %742 = vsyncpa [#allocation5], 1 }
 0x797   :  { %744 = vsyncpa [#allocation5 + $0x1], 1 }
 0x798   :  { %745 = vsyncpa [#allocation8], 1 }
 0x799   :  { %746 = vsyncpa [#allocation6], 1 }
 0x79a   :  { %748 = vsyncpa [#allocation6 + $0x1], 1 }

</bundles_post_ra>
